<compile_context>
chip_gen: v5e
topology: v5e:2x2
jax: 0.10.0
libtpu: 0.0.40
codegen_flags: <defaults>
</compile_context>

<pallas_src>
import functools

import numpy as np
import jax
import jax.numpy as jnp
from jax import lax
from jax.experimental import pallas as pl
from jax.experimental.pallas import tpu as pltpu

LN_EPS = 1e-5  # torch.nn.LayerNorm default eps


def _round_up(x, m):
    return ((x + m - 1) // m) * m


def _layernorm_rows(x, g, b):
    mean = jnp.mean(x, axis=-1, keepdims=True)
    xc = x - mean
    var = jnp.mean(xc * xc, axis=-1, keepdims=True)
    return xc * lax.rsqrt(var + LN_EPS) * g + b


# ----------------- fused kernel: self.norm + proto_conv + masked add -----------------
def protognn_kernel(x_ref, m_ref, nw_ref, nb_ref, gw_ref, gb_ref, p_ref, o_ref,
                    *, conv_iter, scale, eps, p_valid):
    x = x_ref[...].astype(jnp.float32)      # [BM, D]  node-feature row tile
    msk = m_ref[...].astype(jnp.float32)    # [BM, 1]  1.0 where ~idx_train else 0.0
    nw = nw_ref[...].astype(jnp.float32)    # [1, D]   self.norm weight
    nb = nb_ref[...].astype(jnp.float32)    # [1, D]   self.norm bias
    gw = gw_ref[...].astype(jnp.float32)    # [1, D]   norm_input weight
    gb = gb_ref[...].astype(jnp.float32)    # [1, D]   norm_input bias
    p = p_ref[...].astype(jnp.float32)      # [P_pad, D] zero-padded prototypes (k == v)

    xn = _layernorm_rows(x, nw, nb)         # x = self.norm(x)

    # Column-validity mask for the lane-padded prototype axis (hoisted out of loop).
    p_pad = p.shape[0]
    col = lax.broadcasted_iota(jnp.int32, (1, p_pad), 1)
    col_valid = col < p_valid

    # TODO(synk): switch to lax.fori_loop carrying `cur` if conv_iter grows
    # beyond ~3, to keep vreg live ranges bounded.
    cur = xn
    for _ in range(conv_iter):
        z = _layernorm_rows(cur, gw, gb)
        # Contract on the shared D axis directly (no .T -> no XLU transpose per iter).
        # NOTE: operands kept f32 to hold the 2e-5 test tolerance; cast z/attn/p to
        # bf16 here for MXU throughput on v6e/v7x if the tolerance is relaxed.
        dots = lax.dot_general(
            z, p, dimension_numbers=(((1,), (1,)), ((), ())),
            preferred_element_type=jnp.float32) * scale          # [BM, P_pad]
        dots = jnp.where(col_valid, dots, -1e30)                 # mask padded protos
        dots = dots - jnp.max(dots, axis=1, keepdims=True)
        e = jnp.exp(dots)
        inv = pl.reciprocal(jnp.sum(e, axis=1, keepdims=True), approx=False)
        attn = e * inv + eps                                     # softmax(dim=1) + eps
        # Padded prototype rows are zero, so the extra attn columns contribute 0.
        cur = jnp.dot(attn, p, preferred_element_type=jnp.float32)   # [BM, D]

    # aggr == 'add': x[~idx_train] += x_from_proto   (train rows keep xn unchanged)
    o_ref[...] = (xn + msk * cur).astype(o_ref.dtype)


def _pick_block_rows(n, d, p_pad, requested, budget_bytes=16 << 20):
    """Largest row tile (multiple of 8) whose double-buffered footprint fits budget."""
    bm = _round_up(min(requested, max(n, 8)), 8)
    while bm > 8:
        # 2x buffered x-in + out tiles, 2x prototypes, f32 temporaries (xn/cur/z, dots/e/attn)
        est = 4 * (4 * bm * d + 2 * p_pad * d + 3 * bm * d + 3 * bm * p_pad)
        if est <= budget_bytes:
            break
        bm = _round_up(max(bm // 2, 8), 8)
    return bm


# ----------------- ProtoGNN.forward (aggr='add') -----------------
def proto_gnn_forward(prototypes, x, params, idx_train, *, conv_iter, scale, eps,
                      block_rows=512):
    n, d = x.shape
    proto_flat = prototypes.reshape(-1, d)
    p = proto_flat.shape[0]

    # Lane-dense prototype axis: pad C*P to a multiple of 128 so the QK^T
    # intermediate is [BM, 128k] (unmasked stores, MXU-friendly N dim).
    p_pad = _round_up(max(p, 128), 128)
    proto_pad = jnp.zeros((p_pad, d), proto_flat.dtype).at[:p, :].set(proto_flat)

    nontrain_mask = jnp.logical_not(idx_train).astype(x.dtype).reshape(n, 1)

    bm = _pick_block_rows(n, d, p_pad, block_rows)
    grid = (pl.cdiv(n, bm),)

    kernel = functools.partial(protognn_kernel, conv_iter=conv_iter, scale=scale,
                               eps=eps, p_valid=p)

    x_out = pl.pallas_call(
        kernel,
        out_shape=jax.ShapeDtypeStruct((n, d), x.dtype),
        grid=grid,
        in_specs=[
            pl.BlockSpec((bm, d), lambda i: (i, 0)),      # x row tile (pipelined)
            pl.BlockSpec((bm, 1), lambda i: (i, 0)),      # ~idx_train mask tile
            pl.BlockSpec((1, d), lambda i: (0, 0)),       # self.norm weight (resident)
            pl.BlockSpec((1, d), lambda i: (0, 0)),       # self.norm bias
            pl.BlockSpec((1, d), lambda i: (0, 0)),       # norm_input weight
            pl.BlockSpec((1, d), lambda i: (0, 0)),       # norm_input bias
            pl.BlockSpec((p_pad, d), lambda i: (0, 0)),   # prototypes (VMEM-resident)
        ],
        out_specs=pl.BlockSpec((bm, d), lambda i: (i, 0)),
        compiler_params=pltpu.CompilerParams(
            dimension_semantics=("parallel",),            # shard row tiles across v7x's 2 TCs
            vmem_limit_bytes=32 * 1024 * 1024,            # explicit; safe on v5e/v6e/v7x
        ),
    )(x, nontrain_mask,
      params["norm_w"].reshape(1, d), params["norm_b"].reshape(1, d),
      params["ni_w"].reshape(1, d), params["ni_b"].reshape(1, d),
      proto_pad)

    # x2 = concat([x, prototypes.view(-1, D)], 0).  Single copy of each operand.
    x2 = jnp.concatenate([x_out, proto_flat], axis=0)
    # TODO(synk): aggr == 'concat' branch (self.lin on concatenated features) not exercised.
    return x_out, x2


if __name__ == "__main__":
    # small synthetic config
    num_classes, num_proto, D, N = 2, 4, 32, 16
    conv_iter, eps = 2, 1e-8
    scale = D ** (-0.5)

    key = jax.random.PRNGKey(0)
    k1, k2, k3, k4, k5, k6 = jax.random.split(key, 6)
    x = jax.random.normal(k1, (N, D), jnp.float32)
    prototypes = jax.random.normal(k2, (num_classes, num_proto, D), jnp.float32)
    params = {
        "norm_w": 1.0 + 0.1 * jax.random.normal(k3, (D,), jnp.float32),  # self.norm
        "norm_b": 0.1 * jax.random.normal(k4, (D,), jnp.float32),
        "ni_w": 1.0 + 0.1 * jax.random.normal(k5, (D,), jnp.float32),    # norm_input
        "ni_b": 0.1 * jax.random.normal(k6, (D,), jnp.float32),
    }
    # idx_train: first half of the nodes are train, rest are non-train
    idx_train_np = np.zeros(N, dtype=bool)
    idx_train_np[: N // 2] = True
    idx_train = jnp.asarray(idx_train_np)

    fwd = jax.jit(functools.partial(proto_gnn_forward, conv_iter=conv_iter,
                                    scale=scale, eps=eps))
    x_out, x2 = fwd(prototypes, x, params, idx_train)
    jax.block_until_ready((x_out, x2))

    # --- pure-JAX reference check ---
    def ref_ln(v, g, b):
        mean = v.mean(-1, keepdims=True)
        var = ((v - mean) ** 2).mean(-1, keepdims=True)
        return (v - mean) / jnp.sqrt(var + LN_EPS) * g + b

    proto_flat = prototypes.reshape(-1, D)
    xr = ref_ln(x, params["norm_w"], params["norm_b"])
    nontrain = np.nonzero(~idx_train_np)[0]
    xx = xr[nontrain]
    for _ in range(conv_iter):
        xxn = ref_ln(xx, params["ni_w"], params["ni_b"])
        dots = xxn @ proto_flat.T * scale
        attn = jax.nn.softmax(dots, axis=1) + eps
        xx = attn @ proto_flat
    xr_out = xr.at[nontrain].add(xx)
    x2_ref = jnp.concatenate([xr_out, proto_flat], axis=0)

    np.testing.assert_allclose(np.asarray(x_out), np.asarray(xr_out), rtol=2e-5, atol=2e-5)
    np.testing.assert_allclose(np.asarray(x2), np.asarray(x2_ref), rtol=2e-5, atol=2e-5)

    print("KERNEL_OK")
</pallas_src>

<mosaic_0001>
module attributes {stable_mosaic.version = 11 : i64} {
  func.func @protognn_kernel(%arg0: i32, %arg1: memref<16x32xf32, #tpu.memory_space<vmem>>, %arg2: memref<16x1xf32, #tpu.memory_space<vmem>>, %arg3: memref<1x32xf32, #tpu.memory_space<vmem>>, %arg4: memref<1x32xf32, #tpu.memory_space<vmem>>, %arg5: memref<1x32xf32, #tpu.memory_space<vmem>>, %arg6: memref<1x32xf32, #tpu.memory_space<vmem>>, %arg7: memref<128x32xf32, #tpu.memory_space<vmem>>, %arg8: memref<16x32xf32, #tpu.memory_space<vmem>>) attributes {dimension_semantics = [#tpu.dimension_semantics<parallel>], iteration_bounds = array<i64: 1>, scalar_prefetch = 0 : i64, scratch_operands = 0 : i64, tpu.core_type = #tpu.core_type<tc>, window_params = [{transform_indices = @transform_0, window_bounds = array<i64: 16, 32>}, {transform_indices = @transform_1, window_bounds = array<i64: 16, 1>}, {pipeline_mode = #tpu.pipeline_mode<synchronous>, transform_indices = @transform_2, window_bounds = array<i64: 1, 32>}, {pipeline_mode = #tpu.pipeline_mode<synchronous>, transform_indices = @transform_3, window_bounds = array<i64: 1, 32>}, {pipeline_mode = #tpu.pipeline_mode<synchronous>, transform_indices = @transform_4, window_bounds = array<i64: 1, 32>}, {pipeline_mode = #tpu.pipeline_mode<synchronous>, transform_indices = @transform_5, window_bounds = array<i64: 1, 32>}, {pipeline_mode = #tpu.pipeline_mode<synchronous>, transform_indices = @transform_6, window_bounds = array<i64: 128, 32>}, {transform_indices = @transform_7, window_bounds = array<i64: 16, 32>}]} {
    %c0 = arith.constant 0 : index
    %c0_0 = arith.constant 0 : index
    %0 = vector.load %arg1[%c0, %c0_0] : memref<16x32xf32, #tpu.memory_space<vmem>>, vector<16x32xf32>
    %c0_1 = arith.constant 0 : index
    %c0_2 = arith.constant 0 : index
    %1 = vector.load %arg2[%c0_1, %c0_2] : memref<16x1xf32, #tpu.memory_space<vmem>>, vector<16x1xf32>
    %c0_3 = arith.constant 0 : index
    %c0_4 = arith.constant 0 : index
    %2 = vector.load %arg3[%c0_3, %c0_4] : memref<1x32xf32, #tpu.memory_space<vmem>>, vector<1x32xf32>
    %c0_5 = arith.constant 0 : index
    %c0_6 = arith.constant 0 : index
    %3 = vector.load %arg4[%c0_5, %c0_6] : memref<1x32xf32, #tpu.memory_space<vmem>>, vector<1x32xf32>
    %c0_7 = arith.constant 0 : index
    %c0_8 = arith.constant 0 : index
    %4 = vector.load %arg5[%c0_7, %c0_8] : memref<1x32xf32, #tpu.memory_space<vmem>>, vector<1x32xf32>
    %c0_9 = arith.constant 0 : index
    %c0_10 = arith.constant 0 : index
    %5 = vector.load %arg6[%c0_9, %c0_10] : memref<1x32xf32, #tpu.memory_space<vmem>>, vector<1x32xf32>
    %c0_11 = arith.constant 0 : index
    %c0_12 = arith.constant 0 : index
    %6 = vector.load %arg7[%c0_11, %c0_12] : memref<128x32xf32, #tpu.memory_space<vmem>>, vector<128x32xf32>
    %cst = arith.constant dense<0.000000e+00> : vector<16xf32>
    %7 = vector.multi_reduction <add>, %0, %cst [1] : vector<16x32xf32> to vector<16xf32>
    %8 = vector.shape_cast %7 : vector<16xf32> to vector<16x1xf32>
    %cst_13 = arith.constant 3.200000e+01 : f32
    %9 = vector.broadcast %cst_13 : f32 to vector<16x1xf32>
    %10 = arith.divf %8, %9 : vector<16x1xf32>
    %11 = vector.broadcast %10 : vector<16x1xf32> to vector<16x32xf32>
    %12 = arith.subf %0, %11 : vector<16x32xf32>
    %13 = arith.mulf %12, %12 : vector<16x32xf32>
    %cst_14 = arith.constant dense<0.000000e+00> : vector<16xf32>
    %14 = vector.multi_reduction <add>, %13, %cst_14 [1] : vector<16x32xf32> to vector<16xf32>
    %15 = vector.shape_cast %14 : vector<16xf32> to vector<16x1xf32>
    %cst_15 = arith.constant 3.200000e+01 : f32
    %16 = vector.broadcast %cst_15 : f32 to vector<16x1xf32>
    %17 = arith.divf %15, %16 : vector<16x1xf32>
    %cst_16 = arith.constant 9.99999974E-6 : f32
    %18 = vector.broadcast %cst_16 : f32 to vector<16x1xf32>
    %19 = arith.addf %17, %18 : vector<16x1xf32>
    %20 = math.rsqrt %19 : vector<16x1xf32>
    %21 = vector.broadcast %20 : vector<16x1xf32> to vector<16x32xf32>
    %22 = arith.mulf %12, %21 : vector<16x32xf32>
    %23 = vector.broadcast %2 : vector<1x32xf32> to vector<16x32xf32>
    %24 = arith.mulf %22, %23 : vector<16x32xf32>
    %25 = vector.broadcast %3 : vector<1x32xf32> to vector<16x32xf32>
    %26 = arith.addf %24, %25 : vector<16x32xf32>
    %27 = tpu.iota {dimensions = array<i32: 1>} : vector<1x128xi32>
    %c8_i32 = arith.constant 8 : i32
    %28 = vector.broadcast %c8_i32 : i32 to vector<1x128xi32>
    %29 = arith.cmpi slt, %27, %28 : vector<1x128xi32>
    %cst_17 = arith.constant dense<0.000000e+00> : vector<16xf32>
    %30 = vector.multi_reduction <add>, %26, %cst_17 [1] : vector<16x32xf32> to vector<16xf32>
    %31 = vector.shape_cast %30 : vector<16xf32> to vector<16x1xf32>
    %cst_18 = arith.constant 3.200000e+01 : f32
    %32 = vector.broadcast %cst_18 : f32 to vector<16x1xf32>
    %33 = arith.divf %31, %32 : vector<16x1xf32>
    %34 = vector.broadcast %33 : vector<16x1xf32> to vector<16x32xf32>
    %35 = arith.subf %26, %34 : vector<16x32xf32>
    %36 = arith.mulf %35, %35 : vector<16x32xf32>
    %cst_19 = arith.constant dense<0.000000e+00> : vector<16xf32>
    %37 = vector.multi_reduction <add>, %36, %cst_19 [1] : vector<16x32xf32> to vector<16xf32>
    %38 = vector.shape_cast %37 : vector<16xf32> to vector<16x1xf32>
    %cst_20 = arith.constant 3.200000e+01 : f32
    %39 = vector.broadcast %cst_20 : f32 to vector<16x1xf32>
    %40 = arith.divf %38, %39 : vector<16x1xf32>
    %cst_21 = arith.constant 9.99999974E-6 : f32
    %41 = vector.broadcast %cst_21 : f32 to vector<16x1xf32>
    %42 = arith.addf %40, %41 : vector<16x1xf32>
    %43 = math.rsqrt %42 : vector<16x1xf32>
    %44 = vector.broadcast %43 : vector<16x1xf32> to vector<16x32xf32>
    %45 = arith.mulf %35, %44 : vector<16x32xf32>
    %46 = vector.broadcast %4 : vector<1x32xf32> to vector<16x32xf32>
    %47 = arith.mulf %45, %46 : vector<16x32xf32>
    %48 = vector.broadcast %5 : vector<1x32xf32> to vector<16x32xf32>
    %49 = arith.addf %47, %48 : vector<16x32xf32>
    %cst_22 = arith.constant dense<0.000000e+00> : vector<16x128xf32>
    %50 = tpu.matmul %49, %6, %cst_22 {dimension_numbers = #tpu.dot_dimension_numbers<[1], [1], [0], [0], [0, 0, 1, 0], [], []>} : vector<16x32xf32>, vector<128x32xf32>, vector<16x128xf32> -> vector<16x128xf32>
    %cst_23 = arith.constant 0.176776692 : f32
    %51 = vector.broadcast %cst_23 : f32 to vector<16x128xf32>
    %52 = arith.mulf %50, %51 : vector<16x128xf32>
    %cst_24 = arith.constant -1.000000e+30 : f32
    %53 = vector.shape_cast %29 : vector<1x128xi1> to vector<1x128xi1>
    %54 = vector.broadcast %53 : vector<1x128xi1> to vector<16x128xi1>
    %55 = vector.broadcast %cst_24 : f32 to vector<16x128xf32>
    %56 = arith.select %54, %52, %55 : vector<16x128xi1>, vector<16x128xf32>
    %cst_25 = arith.constant dense<0xFF800000> : vector<16xf32>
    %57 = vector.multi_reduction <maximumf>, %56, %cst_25 [1] : vector<16x128xf32> to vector<16xf32>
    %58 = vector.shape_cast %57 : vector<16xf32> to vector<16x1xf32>
    %59 = vector.broadcast %58 : vector<16x1xf32> to vector<16x128xf32>
    %60 = arith.subf %56, %59 : vector<16x128xf32>
    %61 = math.exp %60 : vector<16x128xf32>
    %cst_26 = arith.constant dense<0.000000e+00> : vector<16xf32>
    %62 = vector.multi_reduction <add>, %61, %cst_26 [1] : vector<16x128xf32> to vector<16xf32>
    %63 = vector.shape_cast %62 : vector<16xf32> to vector<16x1xf32>
    %64 = tpu.reciprocal %63 : vector<16x1xf32> -> vector<16x1xf32>
    %65 = vector.broadcast %64 : vector<16x1xf32> to vector<16x128xf32>
    %66 = arith.mulf %61, %65 : vector<16x128xf32>
    %cst_27 = arith.constant 9.99999993E-9 : f32
    %67 = vector.broadcast %cst_27 : f32 to vector<16x128xf32>
    %68 = arith.addf %66, %67 : vector<16x128xf32>
    %cst_28 = arith.constant dense<0.000000e+00> : vector<16x32xf32>
    %69 = tpu.matmul %68, %6, %cst_28 {dimension_numbers = #tpu.dot_dimension_numbers<[1], [0], [0], [1], [0, 0, 1, 1], [], []>} : vector<16x128xf32>, vector<128x32xf32>, vector<16x32xf32> -> vector<16x32xf32>
    %cst_29 = arith.constant dense<0.000000e+00> : vector<16xf32>
    %70 = vector.multi_reduction <add>, %69, %cst_29 [1] : vector<16x32xf32> to vector<16xf32>
    %71 = vector.shape_cast %70 : vector<16xf32> to vector<16x1xf32>
    %cst_30 = arith.constant 3.200000e+01 : f32
    %72 = vector.broadcast %cst_30 : f32 to vector<16x1xf32>
    %73 = arith.divf %71, %72 : vector<16x1xf32>
    %74 = vector.broadcast %73 : vector<16x1xf32> to vector<16x32xf32>
    %75 = arith.subf %69, %74 : vector<16x32xf32>
    %76 = arith.mulf %75, %75 : vector<16x32xf32>
    %cst_31 = arith.constant dense<0.000000e+00> : vector<16xf32>
    %77 = vector.multi_reduction <add>, %76, %cst_31 [1] : vector<16x32xf32> to vector<16xf32>
    %78 = vector.shape_cast %77 : vector<16xf32> to vector<16x1xf32>
    %cst_32 = arith.constant 3.200000e+01 : f32
    %79 = vector.broadcast %cst_32 : f32 to vector<16x1xf32>
    %80 = arith.divf %78, %79 : vector<16x1xf32>
    %cst_33 = arith.constant 9.99999974E-6 : f32
    %81 = vector.broadcast %cst_33 : f32 to vector<16x1xf32>
    %82 = arith.addf %80, %81 : vector<16x1xf32>
    %83 = math.rsqrt %82 : vector<16x1xf32>
    %84 = vector.broadcast %83 : vector<16x1xf32> to vector<16x32xf32>
    %85 = arith.mulf %75, %84 : vector<16x32xf32>
    %86 = vector.broadcast %4 : vector<1x32xf32> to vector<16x32xf32>
    %87 = arith.mulf %85, %86 : vector<16x32xf32>
    %88 = vector.broadcast %5 : vector<1x32xf32> to vector<16x32xf32>
    %89 = arith.addf %87, %88 : vector<16x32xf32>
    %cst_34 = arith.constant dense<0.000000e+00> : vector<16x128xf32>
    %90 = tpu.matmul %89, %6, %cst_34 {dimension_numbers = #tpu.dot_dimension_numbers<[1], [1], [0], [0], [0, 0, 1, 0], [], []>} : vector<16x32xf32>, vector<128x32xf32>, vector<16x128xf32> -> vector<16x128xf32>
    %cst_35 = arith.constant 0.176776692 : f32
    %91 = vector.broadcast %cst_35 : f32 to vector<16x128xf32>
    %92 = arith.mulf %90, %91 : vector<16x128xf32>
    %cst_36 = arith.constant -1.000000e+30 : f32
    %93 = vector.shape_cast %29 : vector<1x128xi1> to vector<1x128xi1>
    %94 = vector.broadcast %93 : vector<1x128xi1> to vector<16x128xi1>
    %95 = vector.broadcast %cst_36 : f32 to vector<16x128xf32>
    %96 = arith.select %94, %92, %95 : vector<16x128xi1>, vector<16x128xf32>
    %cst_37 = arith.constant dense<0xFF800000> : vector<16xf32>
    %97 = vector.multi_reduction <maximumf>, %96, %cst_37 [1] : vector<16x128xf32> to vector<16xf32>
    %98 = vector.shape_cast %97 : vector<16xf32> to vector<16x1xf32>
    %99 = vector.broadcast %98 : vector<16x1xf32> to vector<16x128xf32>
    %100 = arith.subf %96, %99 : vector<16x128xf32>
    %101 = math.exp %100 : vector<16x128xf32>
    %cst_38 = arith.constant dense<0.000000e+00> : vector<16xf32>
    %102 = vector.multi_reduction <add>, %101, %cst_38 [1] : vector<16x128xf32> to vector<16xf32>
    %103 = vector.shape_cast %102 : vector<16xf32> to vector<16x1xf32>
    %104 = tpu.reciprocal %103 : vector<16x1xf32> -> vector<16x1xf32>
    %105 = vector.broadcast %104 : vector<16x1xf32> to vector<16x128xf32>
    %106 = arith.mulf %101, %105 : vector<16x128xf32>
    %cst_39 = arith.constant 9.99999993E-9 : f32
    %107 = vector.broadcast %cst_39 : f32 to vector<16x128xf32>
    %108 = arith.addf %106, %107 : vector<16x128xf32>
    %cst_40 = arith.constant dense<0.000000e+00> : vector<16x32xf32>
    %109 = tpu.matmul %108, %6, %cst_40 {dimension_numbers = #tpu.dot_dimension_numbers<[1], [0], [0], [1], [0, 0, 1, 1], [], []>} : vector<16x128xf32>, vector<128x32xf32>, vector<16x32xf32> -> vector<16x32xf32>
    %110 = vector.broadcast %1 : vector<16x1xf32> to vector<16x32xf32>
    %111 = arith.mulf %110, %109 : vector<16x32xf32>
    %112 = arith.addf %26, %111 : vector<16x32xf32>
    %c0_41 = arith.constant 0 : index
    %c0_42 = arith.constant 0 : index
    %113 = vector.load %arg8[%c0_41, %c0_42] : memref<16x32xf32, #tpu.memory_space<vmem>>, vector<16x32xf32>
    tpu.vector_store %arg8[%c0_41, %c0_42], %112 {strides = array<i32>} : memref<16x32xf32, #tpu.memory_space<vmem>>, vector<16x32xf32>,
    return
  }
  func.func @transform_0(%arg0: i32) -> (i32, i32) {
    %c0_i32 = arith.constant 0 : i32
    %c0_i32_0 = arith.constant 0 : i32
    return %arg0, %c0_i32 : i32, i32
  }
  func.func @transform_1(%arg0: i32) -> (i32, i32) {
    %c0_i32 = arith.constant 0 : i32
    %c0_i32_0 = arith.constant 0 : i32
    return %arg0, %c0_i32 : i32, i32
  }
  func.func @transform_2(%arg0: i32) -> (i32, i32) {
    %c0_i32 = arith.constant 0 : i32
    %c0_i32_0 = arith.constant 0 : i32
    %c0_i32_1 = arith.constant 0 : i32
    return %c0_i32, %c0_i32_0 : i32, i32
  }
  func.func @transform_3(%arg0: i32) -> (i32, i32) {
    %c0_i32 = arith.constant 0 : i32
    %c0_i32_0 = arith.constant 0 : i32
    %c0_i32_1 = arith.constant 0 : i32
    return %c0_i32, %c0_i32_0 : i32, i32
  }
  func.func @transform_4(%arg0: i32) -> (i32, i32) {
    %c0_i32 = arith.constant 0 : i32
    %c0_i32_0 = arith.constant 0 : i32
    %c0_i32_1 = arith.constant 0 : i32
    return %c0_i32, %c0_i32_0 : i32, i32
  }
  func.func @transform_5(%arg0: i32) -> (i32, i32) {
    %c0_i32 = arith.constant 0 : i32
    %c0_i32_0 = arith.constant 0 : i32
    %c0_i32_1 = arith.constant 0 : i32
    return %c0_i32, %c0_i32_0 : i32, i32
  }
  func.func @transform_6(%arg0: i32) -> (i32, i32) {
    %c0_i32 = arith.constant 0 : i32
    %c0_i32_0 = arith.constant 0 : i32
    %c0_i32_1 = arith.constant 0 : i32
    return %c0_i32, %c0_i32_0 : i32, i32
  }
  func.func @transform_7(%arg0: i32) -> (i32, i32) {
    %c0_i32 = arith.constant 0 : i32
    %c0_i32_0 = arith.constant 0 : i32
    return %arg0, %c0_i32 : i32, i32
  }
}

</mosaic_0001>

<bundles_post_ra>
// kernel: proto_gnn_forward.1
= control target key start
LH: loop header
LB: loop body
LE: loop exit
PB: predicated region body
PF: predicated region fallthrough
CT: control target
= control target key end

     0   :  { %vm50_vm0 = vcmask 261120   ;;  %v565_v4 = vmov 32.0   ;;  %s792_s0 = inlined_call_operand.vmem [shape: f32[16,32], index: 0, kind: input, shape index: {}]   ;;  %s793_s2 = inlined_call_operand.vmem [shape: f32[1,32], index: 2, kind: input, shape index: {}]   ;;  %s794_s3 = inlined_call_operand.vmem [shape: f32[1,32], index: 3, kind: input, shape index: {}]   ;;  %s795_s6 = inlined_call_operand.vmem [shape: f32[128,32], index: 6, kind: input, shape index: {}]   ;;  %s796_s4 = inlined_call_operand.vmem [shape: f32[1,32], index: 4, kind: input, shape index: {}]   ;;  %s797_s5 = inlined_call_operand.vmem [shape: f32[1,32], index: 5, kind: input, shape index: {}]   ;;  %s798_s1 = inlined_call_operand.vmem [shape: f32[16,1], index: 1, kind: input, shape index: {}]   ;;  %s799_s7 = inlined_call_operand.vmem [shape: f32[16,32], index: 7, kind: output, shape index: {}]  }
   0x1   :  { %v26_v0 = vld [vmem:[%s792_s0] sm:$0xff]  ;;  %v27_v2 = vld [vmem:[%s792_s0 + $0x8] sm:$0xff]  ;;  %535 = vrcp.f32 %v565_v4  ;;  %v49_v51 = vld [vmem:[%s795_s6 + $0x78] sm:$0xff] }
   0x2   :  { %v51_v1 = vsel %vm50_vm0, %v26_v0, 0.0  ;;  %v54_v3 = vsel %vm50_vm0, %v27_v2, 0.0  ;;  %v531_v35 = vld [vmem:[%s793_s2] ss:$0 sm:$0xff]  ;;  %491 = vmatpush.xpose.msk.msra.mxu0 %vm50_vm0, %v49_v51  ;;  %298 = vmatpush.msra.mxu1 %v49_v51  ;;  %v48_v52 = vld [vmem:[%s795_s6 + $0x70] sm:$0xff]  ;;  %v47_v53 = vld [vmem:[%s795_s6 + $0x68] sm:$0xff] }
   0x3   :  { %52 = vadd.xlane.f32.xlu0 %v51_v1  ;;  %v532_v39 = vld [vmem:[%s794_s3] ss:$0 sm:$0xff]  ;;  %509 = vmatpush.xpose.msk.msra.mxu2 %vm50_vm0, %v49_v51  ;;  %v45_v55 = vld [vmem:[%s795_s6 + $0x58] sm:$0xff]  ;;  %v44_v56 = vld [vmem:[%s795_s6 + $0x50] sm:$0xff] }
   0x4   :  { %448 = vmatpush.msra.mxu3 %v49_v51  ;;  %299 = vmatpush.msra.mxu1 %v48_v52  ;;  %v46_v54 = vld [vmem:[%s795_s6 + $0x60] sm:$0xff]  ;;  %v43_v57 = vld [vmem:[%s795_s6 + $0x48] sm:$0xff]  ;;  %v41_v60 = vld [vmem:[%s795_s6 + $0x38] sm:$0xff] }
   0x5   :  { %v42_v58 = vld [vmem:[%s795_s6 + $0x40] sm:$0xff] }
   0x6   :  { %449 = vmatpush.msra.mxu3 %v48_v52  ;;  %492 = vmatpush.xpose.msk.msra.mxu0 %vm50_vm0, %v48_v52 }
   0x7   :  { %v536_v5 = vpop.eup %535  ;;  %300 = vmatpush.msra.mxu1 %v47_v53  ;;  %510 = vmatpush.xpose.msk.msra.mxu2 %vm50_vm0, %v48_v52 }
   0x8   :  { %v58_v6 = vmul.f32 32.0, %v536_v5  ;;  %vm62_vm1 = vweird.f32 %v536_v5  ;;  %450 = vmatpush.msra.mxu3 %v47_v53 }
   0x9   :  { %301 = vmatpush.msra.mxu1 %v46_v54 }
   0xa   :  { %v59_v7 = vsub.f32 1.0, %v58_v6  ;;  %451 = vmatpush.msra.mxu3 %v46_v54  ;;  %493 = vmatpush.xpose.msk.msra.mxu0 %vm50_vm0, %v47_v53  ;;  %v40_v6 = vld [vmem:[%s795_s6 + $0x30] sm:$0xff] }
   0xb   :  { %55 = vadd.xlane.f32.xlu0 %v54_v3  ;;  %302 = vmatpush.msra.mxu1 %v45_v55 }
   0xc   :  { %v60_v8 = vmul.f32 %v536_v5, %v59_v7  ;;  %511 = vmatpush.xpose.msk.msra.mxu2 %vm50_vm0, %v47_v53  ;;  %452 = vmatpush.msra.mxu3 %v45_v55  ;;  %v39_v7 = vld [vmem:[%s795_s6 + $0x28] sm:$0xff] }
   0xd   :  { %303 = vmatpush.msra.mxu1 %v44_v56 }
   0xe   :  { %v61_v9 = vadd.f32 %v536_v5, %v60_v8  ;;  %453 = vmatpush.msra.mxu3 %v44_v56  ;;  %494 = vmatpush.xpose.msk.msra.mxu0 %vm50_vm0, %v46_v54  ;;  %v38_v8 = vld [vmem:[%s795_s6 + $0x20] sm:$0xff] }
   0xf   :  { %304 = vmatpush.msra.mxu1 %v43_v57 }
  0x10   :  { %v615_v10 = vsel %vm62_vm1, %v536_v5, %v61_v9  ;;  %512 = vmatpush.xpose.msk.msra.mxu2 %vm50_vm0, %v46_v54  ;;  %454 = vmatpush.msra.mxu3 %v43_v57  ;;  %v37_v9 = vld [vmem:[%s795_s6 + $0x18] sm:$0xff] }
  0x11   :  { %305 = vmatpush.msra.mxu1 %v42_v58 }
  0x12   :  { %455 = vmatpush.msra.mxu3 %v42_v58  ;;  %495 = vmatpush.xpose.msk.msra.mxu0 %vm50_vm0, %v45_v55 }
  0x13   :  { %306 = vmatpush.msra.mxu1 %v41_v60 }
  0x14   :  { %513 = vmatpush.xpose.msk.msra.mxu2 %vm50_vm0, %v45_v55  ;;  %456 = vmatpush.msra.mxu3 %v41_v60 }
  0x15   :  { %307 = vmatpush.msra.mxu1 %v40_v6 }
  0x16   :  { %496 = vmatpush.xpose.msk.msra.mxu0 %vm50_vm0, %v44_v56  ;;  %457 = vmatpush.msra.mxu3 %v40_v6 }
  0x17   :  { %308 = vmatpush.msra.mxu1 %v39_v7 }
  0x18   :  { %514 = vmatpush.xpose.msk.msra.mxu2 %vm50_vm0, %v44_v56  ;;  %458 = vmatpush.msra.mxu3 %v39_v7 }
  0x19   :  { %309 = vmatpush.msra.mxu1 %v38_v8 }
  0x1a   :  { %497 = vmatpush.xpose.msk.msra.mxu0 %vm50_vm0, %v43_v57  ;;  %459 = vmatpush.msra.mxu3 %v38_v8 }
  0x1b   :  { %310 = vmatpush.msra.mxu1 %v37_v9 }
  0x1c   :  { %515 = vmatpush.xpose.msk.msra.mxu2 %vm50_vm0, %v43_v57  ;;  %460 = vmatpush.msra.mxu3 %v37_v9 }
  0x1e   :  { %498 = vmatpush.xpose.msk.msra.mxu0 %vm50_vm0, %v42_v58 }
  0x20   :  { %516 = vmatpush.xpose.msk.msra.mxu2 %vm50_vm0, %v42_v58 }
  0x22   :  { %499 = vmatpush.xpose.msk.msra.mxu0 %vm50_vm0, %v41_v60 }
  0x24   :  { %517 = vmatpush.xpose.msk.msra.mxu2 %vm50_vm0, %v41_v60 }
  0x26   :  { %500 = vmatpush.xpose.msk.msra.mxu0 %vm50_vm0, %v40_v6 }
  0x28   :  { %518 = vmatpush.xpose.msk.msra.mxu2 %vm50_vm0, %v40_v6 }
  0x2a   :  { %501 = vmatpush.xpose.msk.msra.mxu0 %vm50_vm0, %v39_v7 }
  0x2c   :  { %519 = vmatpush.xpose.msk.msra.mxu2 %vm50_vm0, %v39_v7 }
  0x2e   :  { %502 = vmatpush.xpose.msk.msra.mxu0 %vm50_vm0, %v38_v8 }
  0x30   :  { %520 = vmatpush.xpose.msk.msra.mxu2 %vm50_vm0, %v38_v8 }
  0x32   :  { %503 = vmatpush.xpose.msk.msra.mxu0 %vm50_vm0, %v37_v9 }
  0x34   :  { %521 = vmatpush.xpose.msk.msra.mxu2 %vm50_vm0, %v37_v9 }
  0x76   :  { %v53_v11 = vpop.xlane.xlu0 %52 }
  0x77   :  { %v64_v12 = vmul.f32 %v615_v10, %v53_v11  ;;  %v36_v11 = vld [vmem:[%s795_s6 + $0x10] sm:$0xff] }
  0x78   :  { %504 = vmatpush.xpose.msk.msra.mxu0 %vm50_vm0, %v36_v11  ;;  %311 = vmatpush.msra.mxu1 %v36_v11 }
  0x79   :  { %v66_v13 = vsub.f32 %v26_v0, %v64_v12  ;;  %522 = vmatpush.xpose.msk.msra.mxu2 %vm50_vm0, %v36_v11  ;;  %461 = vmatpush.msra.mxu3 %v36_v11  ;;  %v35_v12 = vld [vmem:[%s795_s6 + $0x8] sm:$0xff] }
  0x7a   :  { %312 = vmatpush.msra.mxu1 %v35_v12 }
  0x7b   :  { %v68_v14 = vmul.f32 %v66_v13, %v66_v13  ;;  %462 = vmatpush.msra.mxu3 %v35_v12 }
  0x7c   :  { %505 = vmatpush.xpose.msk.msra.mxu0 %vm50_vm0, %v35_v12 }
  0x7d   :  { %v70_v15 = vsel %vm50_vm0, %v68_v14, 0.0  ;;  %523 = vmatpush.xpose.msk.msra.mxu2 %vm50_vm0, %v35_v12 }
  0x7e   :  { %71 = vadd.xlane.f32.xlu1 %v70_v15  ;;  %v56_v16 = vpop.xlane.xlu0 %55 }
  0x7f   :  { %v65_v17 = vmul.f32 %v615_v10, %v56_v16 }
  0x81   :  { %v67_v18 = vsub.f32 %v27_v2, %v65_v17 }
  0x83   :  { %v69_v19 = vmul.f32 %v67_v18, %v67_v18 }
  0x85   :  { %v73_v20 = vsel %vm50_vm0, %v69_v19, 0.0 }
  0x86   :  { %74 = vadd.xlane.f32.xlu1 %v73_v20 }
  0xf1   :  { %v72_v21 = vpop.xlane.xlu1 %71 }
  0xf2   :  { %v76_v22 = vmul.f32 %v72_v21, %v615_v10 }
  0xf4   :  { %v78_v23 = vadd.f32 1e-05, %v76_v22 }
  0xf6   :  { %537 = vrsqrt.f32 %v78_v23  ;;  %vm86_vm3 = vweird.f32 %v78_v23 }
  0xf9   :  { %v75_v24 = vpop.xlane.xlu1 %74 }
  0xfa   :  { %v77_v25 = vmul.f32 %v75_v24, %v615_v10 }
  0xfc   :  { %v538_v26 = vpop.eup %537  ;;  %v79_v27 = vadd.f32 1e-05, %v77_v25 }
  0xfd   :  { %v81_v28 = vmul.f32 %v538_v26, %v78_v23  ;;  %vm87_vm2 = vweird.f32 %v538_v26 }
  0xfe   :  { %539 = vrsqrt.f32 %v79_v27  ;;  %vm88_vm4 = vmor %vm86_vm3, %vm87_vm2  ;;  %vm96_vm6 = vweird.f32 %v79_v27 }
  0xff   :  { %v82_v29 = vmul.f32 %v538_v26, %v81_v28  ;;  %v736_v28 = vld [vmem:[%s796_s4] ss:$0 sm:$0xff] }
 0x101   :  { %v83_v30 = vmul.f32 0.5, %v82_v29 }
 0x103   :  { %v84_v31 = vsub.f32 1.5, %v83_v30 }
 0x104   :  { %v540_v32 = vpop.eup %539 }
 0x105   :  { %v85_v33 = vmul.f32 %v538_v26, %v84_v31  ;;  %v91_v34 = vmul.f32 %v540_v32, %v79_v27  ;;  %vm97_vm5 = vweird.f32 %v540_v32 }
 0x106   :  { %vm98_vm7 = vmor %vm96_vm6, %vm97_vm5 }
 0x107   :  { %v89_v36 = vsel %vm88_vm4, %v538_v26, %v85_v33  ;;  %v92_v37 = vmul.f32 %v540_v32, %v91_v34 }
 0x108   :  { %v100_v38 = vmul.f32 %v89_v36, %v66_v13  ;;  %v34_v13 = vld [vmem:[%s795_s6] sm:$0xff] }
 0x109   :  { %v93_v40 = vmul.f32 0.5, %v92_v37  ;;  %506 = vmatpush.xpose.msk.msra.mxu0 %vm50_vm0, %v34_v13  ;;  %313 = vmatpush.msra.mxu1 %v34_v13 }
 0x10a   :  { %v105_v41 = vmul.f32 %v531_v35, %v100_v38  ;;  %524 = vmatpush.xpose.msk.msra.mxu2 %vm50_vm0, %v34_v13  ;;  %463 = vmatpush.msra.mxu3 %v34_v13 }
 0x10b   :  { %v94_v42 = vsub.f32 1.5, %v93_v40 }
 0x10c   :  { %v629_v43 = vadd.f32 %v532_v39, %v105_v41 }
 0x10d   :  { %v95_v44 = vmul.f32 %v540_v32, %v94_v42  ;;  %v112_v42 = vlaneseq }
 0x10e   :  { %v115_v45 = vsel %vm50_vm0, %v629_v43, 0.0 }
 0x10f   :  { %v99_v46 = vsel %vm98_vm7, %v540_v32, %v95_v44  ;;  %116 = vadd.xlane.f32.xlu2 %v115_v45  ;;  %v742_v32 = vld [vmem:[%s797_s5] ss:$0 sm:$0xff]  ;;  %v751_v44 = vand.u32 127, %v112_v42 }
 0x110   :  { %v101_v47 = vmul.f32 %v99_v46, %v67_v18 }
 0x111   :  { %vm114_vm14 = vcmp.lt.s32.totalorder %v751_v44, 8  ;;  %v28_v44 = vld [vmem:[%s798_s1] sm:$0xff] }
 0x112   :  { %v106_v48 = vmul.f32 %v531_v35, %v101_v47 }
 0x114   :  { %v633_v49 = vadd.f32 %v532_v39, %v106_v48 }
 0x116   :  { %v118_v50 = vsel %vm50_vm0, %v633_v49, 0.0 }
 0x117   :  { %119 = vadd.xlane.f32.xlu2 %v118_v50 }
 0x182   :  { %v117_v59 = vpop.xlane.xlu2 %116 }
 0x183   :  { %v121_v61 = vmul.f32 %v117_v59, %v615_v10 }
 0x185   :  { %v676_v62 = vsub.f32 %v629_v43, %v121_v61 }
 0x187   :  { %v125_v63 = vmul.f32 %v676_v62, %v676_v62 }
 0x189   :  { %v127_v0 = vsel %vm50_vm0, %v125_v63, 0.0 }
 0x18a   :  { %128 = vadd.xlane.f32.xlu0 %v127_v0  ;;  %v120_v1 = vpop.xlane.xlu2 %119 }
 0x18b   :  { %v122_v2 = vmul.f32 %v120_v1, %v615_v10 }
 0x18d   :  { %v687_v3 = vsub.f32 %v633_v49, %v122_v2 }
 0x18f   :  { %v126_v4 = vmul.f32 %v687_v3, %v687_v3 }
 0x191   :  { %v130_v5 = vsel %vm50_vm0, %v126_v4, 0.0 }
 0x192   :  { %131 = vadd.xlane.f32.xlu1 %v130_v5 }
 0x1fd   :  { %v129_v14 = vpop.xlane.xlu0 %128 }
 0x1fe   :  { %v133_v15 = vmul.f32 %v129_v14, %v615_v10 }
 0x200   :  { %v135_v16 = vadd.f32 1e-05, %v133_v15 }
 0x202   :  { %541 = vrsqrt.f32 %v135_v16  ;;  %vm143_vm9 = vweird.f32 %v135_v16 }
 0x205   :  { %v132_v17 = vpop.xlane.xlu1 %131 }
 0x206   :  { %v134_v18 = vmul.f32 %v132_v17, %v615_v10 }
 0x208   :  { %v542_v19 = vpop.eup %541  ;;  %v136_v20 = vadd.f32 1e-05, %v134_v18 }
 0x209   :  { %v138_v21 = vmul.f32 %v542_v19, %v135_v16  ;;  %vm144_vm8 = vweird.f32 %v542_v19 }
 0x20a   :  { %543 = vrsqrt.f32 %v136_v20  ;;  %vm145_vm10 = vmor %vm143_vm9, %vm144_vm8  ;;  %vm153_vm12 = vweird.f32 %v136_v20 }
 0x20b   :  { %v139_v22 = vmul.f32 %v542_v19, %v138_v21 }
 0x20d   :  { %v140_v23 = vmul.f32 0.5, %v139_v22 }
 0x20f   :  { %v141_v24 = vsub.f32 1.5, %v140_v23 }
 0x210   :  { %v544_v25 = vpop.eup %543 }
 0x211   :  { %v142_v26 = vmul.f32 %v542_v19, %v141_v24  ;;  %v148_v27 = vmul.f32 %v544_v25, %v136_v20  ;;  %vm154_vm11 = vweird.f32 %v544_v25 }
 0x212   :  { %vm155_vm13 = vmor %vm153_vm12, %vm154_vm11 }
 0x213   :  { %v146_v29 = vsel %vm145_vm10, %v542_v19, %v142_v26  ;;  %v149_v30 = vmul.f32 %v544_v25, %v148_v27 }
 0x214   :  { %v157_v31 = vmul.f32 %v146_v29, %v676_v62 }
 0x215   :  { %v150_v33 = vmul.f32 0.5, %v149_v30 }
 0x216   :  { %v162_v34 = vmul.f32 %v736_v28, %v157_v31 }
 0x217   :  { %v151_v35 = vsub.f32 1.5, %v150_v33 }
 0x218   :  { %v167_v36 = vadd.f32 %v742_v32, %v162_v34 }
 0x219   :  { %v152_v37 = vmul.f32 %v544_v25, %v151_v35 }
 0x21a   :  { %507 = vmatmul.msk.f32.vlgmr.msra.gmra.mxu0 %vm50_vm0, %v167_v36 }
 0x21b   :  { %v156_v38 = vsel %vm155_vm13, %v544_v25, %v152_v37 }
 0x21c   :  { %v158_v39 = vmul.f32 %v156_v38, %v687_v3 }
 0x21e   :  { %v163_v40 = vmul.f32 %v736_v28, %v158_v39 }
 0x220   :  { %v168_v41 = vadd.f32 %v742_v32, %v163_v40 }
 0x222   :  { %508 = vmatmul.msk.f32.gmra.mxu0 %vm50_vm0, %v168_v41 }
 0x297   :  { %v240_v45 = vpop.f32.mrf.mxu0 }
 0x298   :  { %v246_v46 = vmul.f32 0.17677669, %v240_v45 }
 0x29a   :  { %v250_v47 = vsel %vm114_vm14, %v246_v46, -1e+30 }
 0x29b   :  { %252 = vmax.xlane.f32.xlu2 %v250_v47 }
 0x29f   :  { %v243_v48 = vpop.f32.mrf.mxu0 }
 0x2a0   :  { %v247_v50 = vmul.f32 0.17677669, %v243_v48 }
 0x2a2   :  { %v251_v51 = vsel %vm114_vm14, %v247_v50, -1e+30 }
 0x2a3   :  { %254 = vmax.xlane.f32.xlu0 %v251_v51 }
 0x30e   :  { %v253_v52 = vpop.xlane.xlu2 %252 }
 0x30f   :  { %v256_v53 = vsub.f32 %v250_v47, %v253_v52 }
 0x311   :  { %v258_v54 = vmul.f32 1.442695, %v256_v53 }
 0x313   :  { %545 = vpow2.f32 %v258_v54 }
 0x316   :  { %v255_v55 = vpop.xlane.xlu0 %254 }
 0x317   :  { %v257_v56 = vsub.f32 %v251_v51, %v255_v55 }
 0x319   :  { %v546_v57 = vpop.eup %545  ;;  %v260_v58 = vmul.f32 1.442695, %v257_v56 }
 0x31a   :  { %262 = vadd.xlane.f32.xlu1 %v546_v57 }
 0x31b   :  { %547 = vpow2.f32 %v260_v58 }
 0x321   :  { %v548_v59 = vpop.eup %547 }
 0x322   :  { %264 = vadd.xlane.f32.xlu2 %v548_v59 }
 0x38d   :  { %v263_v60 = vpop.xlane.xlu1 %262 }
 0x38e   :  { %549 = vrcp.f32 %v263_v60  ;;  %v277_v1 = vand.u32 2147483648, %v263_v60  ;;  %v275_v3 = vand.u32 2147483647, %v263_v60  ;;  %vm271_vm1 = vweird.f32 %v263_v60 }
 0x390   :  { %v278_v6 = vor.u32 1.1754944e-38, %v277_v1  ;;  %vm276_vm3 = vcmp.eq.f32.partialorder %v275_v3, 8.507059e+37 }
 0x394   :  { %v550_v61 = vpop.eup %549 }
 0x395   :  { %v267_v62 = vmul.f32 %v550_v61, %v263_v60  ;;  %v265_v63 = vpop.xlane.xlu2 %264  ;;  %vm272_vm15 = vweird.f32 %v550_v61 }
 0x396   :  { %551 = vrcp.f32 %v265_v63  ;;  %vm273_vm2 = vmor %vm271_vm1, %vm272_vm15  ;;  %v291_v13 = vand.u32 2147483648, %v265_v63  ;;  %v289_v16 = vand.u32 2147483647, %v265_v63  ;;  %vm285_vm5 = vweird.f32 %v265_v63 }
 0x397   :  { %v268_v0 = vsub.f32 1.0, %v267_v62 }
 0x398   :  { %v292_v18 = vor.u32 1.1754944e-38, %v291_v13  ;;  %vm290_vm7 = vcmp.eq.f32.partialorder %v289_v16, 8.507059e+37  ;;  %v29_v16 = vld [vmem:[%s798_s1 + $0x8] sm:$0xff] }
 0x399   :  { %v269_v2 = vmul.f32 %v550_v61, %v268_v0 }
 0x39b   :  { %v270_v4 = vadd.f32 %v550_v61, %v269_v2 }
 0x39c   :  { %v552_v5 = vpop.eup %551 }
 0x39d   :  { %v281_v7 = vmul.f32 %v552_v5, %v265_v63  ;;  %v274_v8 = vsel %vm273_vm2, %v550_v61, %v270_v4  ;;  %vm286_vm4 = vweird.f32 %v552_v5 }
 0x39e   :  { %v279_v9 = vsel %vm276_vm3, %v278_v6, %v274_v8  ;;  %vm287_vm6 = vmor %vm285_vm5, %vm286_vm4 }
 0x39f   :  { %v282_v11 = vsub.f32 1.0, %v281_v7  ;;  %v294_v12 = vmul.f32 %v546_v57, %v279_v9 }
 0x3a1   :  { %v283_v14 = vmul.f32 %v552_v5, %v282_v11  ;;  %v296_v15 = vadd.f32 1e-08, %v294_v12 }
 0x3a3   :  { %314 = vmatmul.f32.vlgmr.msra.gmra.mxu1 %v296_v15  ;;  %v284_v17 = vadd.f32 %v552_v5, %v283_v14 }
 0x3a5   :  { %v288_v19 = vsel %vm287_vm6, %v552_v5, %v284_v17  ;;  %v566_v17 = vmov 0  }
 0x3a6   :  { %v293_v20 = vsel %vm290_vm7, %v292_v18, %v288_v19  ;;  %530 = vset.pattern.permute.xlu0 %v566_v17  ;;  %529 = vset.pattern.permute.xlu2 %v566_v17 }
 0x3a7   :  { %v295_v21 = vmul.f32 %v548_v59, %v293_v20 }
 0x3a9   :  { %v297_v22 = vadd.f32 1e-08, %v295_v21 }
 0x3ab   :  { %317 = vmatmul.f32.gmra.mxu1 %v297_v22 }
 0x420   :  { %v315_v23 = vpop.f32.mrf.mxu1 }
 0x421   :  { %v321_v24 = vsel %vm50_vm0, %v315_v23, 0.0 }
 0x422   :  { %322 = vadd.xlane.f32.xlu0 %v321_v24 }
 0x428   :  { %v318_v25 = vpop.f32.mrf.mxu1 }
 0x429   :  { %v324_v26 = vsel %vm50_vm0, %v318_v25, 0.0 }
 0x42a   :  { %325 = vadd.xlane.f32.xlu1 %v324_v26 }
 0x495   :  { %v323_v27 = vpop.xlane.xlu0 %322 }
 0x496   :  { %v327_v29 = vmul.f32 %v323_v27, %v615_v10 }
 0x498   :  { %v329_v30 = vsub.f32 %v315_v23, %v327_v29 }
 0x49a   :  { %v331_v31 = vmul.f32 %v329_v30, %v329_v30 }
 0x49c   :  { %v333_v33 = vsel %vm50_vm0, %v331_v31, 0.0 }
 0x49d   :  { %v326_v34 = vpop.xlane.xlu1 %325  ;;  %334 = vadd.xlane.f32.xlu2 %v333_v33 }
 0x49e   :  { %v328_v35 = vmul.f32 %v326_v34, %v615_v10 }
 0x4a0   :  { %v330_v36 = vsub.f32 %v318_v25, %v328_v35 }
 0x4a2   :  { %v332_v37 = vmul.f32 %v330_v36, %v330_v36 }
 0x4a4   :  { %v336_v38 = vsel %vm50_vm0, %v332_v37, 0.0 }
 0x4a5   :  { %337 = vadd.xlane.f32.xlu0 %v336_v38 }
 0x510   :  { %v335_v39 = vpop.xlane.xlu2 %334 }
 0x511   :  { %v339_v40 = vmul.f32 %v335_v39, %v615_v10 }
 0x513   :  { %v341_v41 = vadd.f32 1e-05, %v339_v40 }
 0x515   :  { %553 = vrsqrt.f32 %v341_v41  ;;  %vm349_vm9 = vweird.f32 %v341_v41 }
 0x518   :  { %v338_v42 = vpop.xlane.xlu0 %337 }
 0x519   :  { %v340_v45 = vmul.f32 %v338_v42, %v615_v10 }
 0x51b   :  { %v554_v46 = vpop.eup %553  ;;  %v342_v47 = vadd.f32 1e-05, %v340_v45 }
 0x51c   :  { %v344_v48 = vmul.f32 %v554_v46, %v341_v41  ;;  %vm350_vm8 = vweird.f32 %v554_v46 }
 0x51d   :  { %555 = vrsqrt.f32 %v342_v47  ;;  %vm351_vm10 = vmor %vm349_vm9, %vm350_vm8  ;;  %vm359_vm12 = vweird.f32 %v342_v47 }
 0x51e   :  { %v345_v50 = vmul.f32 %v554_v46, %v344_v48 }
 0x520   :  { %v346_v51 = vmul.f32 0.5, %v345_v50 }
 0x522   :  { %v347_v52 = vsub.f32 1.5, %v346_v51 }
 0x523   :  { %v556_v53 = vpop.eup %555 }
 0x524   :  { %v348_v54 = vmul.f32 %v554_v46, %v347_v52  ;;  %v354_v55 = vmul.f32 %v556_v53, %v342_v47  ;;  %vm360_vm11 = vweird.f32 %v556_v53 }
 0x525   :  { %vm361_vm13 = vmor %vm359_vm12, %vm360_vm11 }
 0x526   :  { %v352_v56 = vsel %vm351_vm10, %v554_v46, %v348_v54  ;;  %v355_v57 = vmul.f32 %v556_v53, %v354_v55 }
 0x527   :  { %v363_v58 = vmul.f32 %v352_v56, %v329_v30 }
 0x528   :  { %v356_v59 = vmul.f32 0.5, %v355_v57 }
 0x529   :  { %v365_v60 = vmul.f32 %v736_v28, %v363_v58 }
 0x52a   :  { %v357_v10 = vsub.f32 1.5, %v356_v59 }
 0x52b   :  { %v367_v61 = vadd.f32 %v742_v32, %v365_v60 }
 0x52c   :  { %v358_v62 = vmul.f32 %v556_v53, %v357_v10 }
 0x52d   :  { %525 = vmatmul.msk.f32.vlgmr.msra.gmra.mxu2 %vm50_vm0, %v367_v61 }
 0x52e   :  { %v362_v63 = vsel %vm361_vm13, %v556_v53, %v358_v62 }
 0x52f   :  { %v364_v0 = vmul.f32 %v362_v63, %v330_v36 }
 0x531   :  { %v366_v1 = vmul.f32 %v736_v28, %v364_v0 }
 0x533   :  { %v368_v2 = vadd.f32 %v742_v32, %v366_v1 }
 0x535   :  { %526 = vmatmul.msk.f32.gmra.mxu2 %vm50_vm0, %v368_v2 }
 0x5b0   :  { %v392_v3 = vpop.f32.mrf.mxu2 }
 0x5b1   :  { %v398_v4 = vmul.f32 0.17677669, %v392_v3 }
 0x5b3   :  { %v400_v5 = vsel %vm114_vm14, %v398_v4, -1e+30 }
 0x5b4   :  { %402 = vmax.xlane.f32.xlu1 %v400_v5 }
 0x5b8   :  { %v395_v6 = vpop.f32.mrf.mxu2 }
 0x5b9   :  { %v399_v7 = vmul.f32 0.17677669, %v395_v6 }
 0x5bb   :  { %v401_v8 = vsel %vm114_vm14, %v399_v7, -1e+30 }
 0x5bc   :  { %404 = vmax.xlane.f32.xlu2 %v401_v8 }
 0x5d4   :  { %473 = vperm.xlu2 %529, %v28_v44  }
 0x627   :  { %v403_v9 = vpop.xlane.xlu1 %402 }
 0x628   :  { %v406_v11 = vsub.f32 %v400_v5, %v403_v9 }
 0x62a   :  { %v408_v12 = vmul.f32 1.442695, %v406_v11 }
 0x62c   :  { %557 = vpow2.f32 %v408_v12 }
 0x62f   :  { %v405_v28 = vpop.xlane.xlu2 %404 }
 0x630   :  { %v407_v32 = vsub.f32 %v401_v8, %v405_v28 }
 0x632   :  { %v558_v13 = vpop.eup %557  ;;  %v410_v14 = vmul.f32 1.442695, %v407_v32 }
 0x633   :  { %412 = vadd.xlane.f32.xlu0 %v558_v13 }
 0x634   :  { %559 = vpow2.f32 %v410_v14 }
 0x637   :  { %v474_v48 = vpop.permute.xlu2 %473 }
 0x63a   :  { %v560_v15 = vpop.eup %559 }
 0x63b   :  { %414 = vadd.xlane.f32.xlu1 %v560_v15 }
 0x647   :  { %478 = vperm.xlu0 %530, %v29_v16  }
 0x6a6   :  { %v413_v18 = vpop.xlane.xlu0 %412 }
 0x6a7   :  { %561 = vrcp.f32 %v413_v18  ;;  %v427_v23 = vand.u32 2147483648, %v413_v18  ;;  %v425_v25 = vand.u32 2147483647, %v413_v18  ;;  %vm421_vm15 = vweird.f32 %v413_v18 }
 0x6a9   :  { %v428_v29 = vor.u32 1.1754944e-38, %v427_v23  ;;  %vm426_vm2 = vcmp.eq.f32.partialorder %v425_v25, 8.507059e+37 }
 0x6ad   :  { %v562_v19 = vpop.eup %561 }
 0x6ae   :  { %v417_v20 = vmul.f32 %v562_v19, %v413_v18  ;;  %v415_v21 = vpop.xlane.xlu1 %414  ;;  %vm422_vm14 = vweird.f32 %v562_v19 }
 0x6af   :  { %563 = vrcp.f32 %v415_v21  ;;  %vm423_vm1 = vmor %vm421_vm15, %vm422_vm14  ;;  %v441_v36 = vand.u32 2147483648, %v415_v21  ;;  %v439_v39 = vand.u32 2147483647, %v415_v21  ;;  %vm435_vm4 = vweird.f32 %v415_v21 }
 0x6b0   :  { %v418_v22 = vsub.f32 1.0, %v417_v20 }
 0x6b1   :  { %v442_v41 = vor.u32 1.1754944e-38, %v441_v36  ;;  %vm440_vm6 = vcmp.eq.f32.partialorder %v439_v39, 8.507059e+37 }
 0x6b2   :  { %v419_v24 = vmul.f32 %v562_v19, %v418_v22 }
 0x6b4   :  { %v420_v26 = vadd.f32 %v562_v19, %v419_v24 }
 0x6b5   :  { %v564_v27 = vpop.eup %563 }
 0x6b6   :  { %v431_v30 = vmul.f32 %v564_v27, %v415_v21  ;;  %v424_v31 = vsel %vm423_vm1, %v562_v19, %v420_v26  ;;  %vm436_vm3 = vweird.f32 %v564_v27 }
 0x6b7   :  { %v429_v33 = vsel %vm426_vm2, %v428_v29, %v424_v31  ;;  %vm437_vm5 = vmor %vm435_vm4, %vm436_vm3 }
 0x6b8   :  { %v432_v34 = vsub.f32 1.0, %v431_v30  ;;  %v444_v35 = vmul.f32 %v558_v13, %v429_v33 }
 0x6b9   :  { %v479_v53 = vpop.permute.xlu0 %478 }
 0x6ba   :  { %v433_v37 = vmul.f32 %v564_v27, %v432_v34  ;;  %v446_v38 = vadd.f32 1e-08, %v444_v35 }
 0x6bc   :  { %464 = vmatmul.f32.vlgmr.msra.gmra.mxu3 %v446_v38  ;;  %v434_v40 = vadd.f32 %v564_v27, %v433_v37 }
 0x6be   :  { %v438_v42 = vsel %vm437_vm5, %v564_v27, %v434_v40 }
 0x6bf   :  { %v443_v45 = vsel %vm440_vm6, %v442_v41, %v438_v42 }
 0x6c0   :  { %v445_v46 = vmul.f32 %v560_v15, %v443_v45 }
 0x6c2   :  { %v447_v47 = vadd.f32 1e-08, %v445_v46 }
 0x6c4   :  { %467 = vmatmul.f32.gmra.mxu3 %v447_v47 }
 0x73f   :  { %v465_v50 = vpop.f32.mrf.mxu3 }
 0x740   :  { %v481_v51 = vmul.f32 %v474_v48, %v465_v50 }
 0x742   :  { %v483_v52 = vadd.f32 %v481_v51, %v629_v43 }
 0x744   :  { %485 = vst.msk [vmem:[%s799_s7] sm:$0xff] %vm50_vm0, %v483_v52 }
 0x747   :  { %v468_v54 = vpop.f32.mrf.mxu3 }
 0x748   :  { %v482_v55 = vmul.f32 %v479_v53, %v468_v54 }
 0x74a   :  { %v484_v56 = vadd.f32 %v482_v55, %v633_v49 }
 0x74c   :  { %486 = vst.msk [vmem:[%s799_s7 + $0x8] sm:$0xff] %vm50_vm0, %v484_v56 }

</bundles_post_ra>
